<compile_context>
chip_gen: v6e
topology: v6e:2x2x1
jax: 0.10.0
libtpu: 0.0.40
codegen_flags: <defaults>
</compile_context>

<pallas_src>
import functools

import jax
import jax.numpy as jnp
from jax.experimental import pallas as pl
from jax.experimental.pallas import tpu as pltpu


# ---------------------------------------------------------------------------
# Fused kernel: gate + all experts + gate-weighted sum + all towers.
# ---------------------------------------------------------------------------
def omoe_kernel(x_ref, gw_ref, gexpand_ref, ew_ref, eb_ref, sel_ref,
                tw1_ref, tb1_ref, tw2_ref, tb2_ref, out_ref):
    x = x_ref[...]

    # Gate values (bb, E), then broadcast over each expert's H columns via a
    # tiny constant 0/1 matmul -> (bb, E*H).  Much cheaper than contracting
    # a repeated (D, E*H) gate against x.
    gates = jnp.dot(x, gw_ref[...], preferred_element_type=jnp.float32)
    gates_exp = jnp.dot(gates, gexpand_ref[...],
                        preferred_element_type=jnp.float32)

    # All experts' Linear+ReLU in a single wide matmul: (bb, E*H).
    experts = jnp.maximum(
        jnp.dot(x, ew_ref[...], preferred_element_type=jnp.float32)
        + eb_ref[...],
        0.0,
    )

    # Gate-weighted sum over experts via stacked-identity matmul: (bb, H).
    shared = jnp.dot(gates_exp * experts, sel_ref[...],
                     preferred_element_type=jnp.float32)

    # All tower hidden layers in one matmul: (bb, T*Ht).
    h = jnp.maximum(
        jnp.dot(shared, tw1_ref[...], preferred_element_type=jnp.float32)
        + tb1_ref[...],
        0.0,
    )

    # Block-diagonal second layer collapses each tower to its scalar: (bb, T).
    o = jnp.dot(h, tw2_ref[...], preferred_element_type=jnp.float32) \
        + tb2_ref[...]
    out_ref[...] = jax.nn.sigmoid(o)


# ---------------------------------------------------------------------------
# Wrapper
# ---------------------------------------------------------------------------
@functools.partial(jax.jit, static_argnames=("use_bf16",))
def omoe_forward(x, gate_w, expert_w, expert_b, tower_w1, tower_b1, tower_w2,
                 tower_b2, use_bf16=False):
    B, D = x.shape
    E, _, H = expert_w.shape
    T, _, Ht = tower_w1.shape

    f32 = jnp.float32

    # ---- Weight plumbing (layout only; tiny, once per call) ----
    # expand[e, e*H + h] = 1  -> (gates @ expand)[:, e*H+h] = gates[:, e]
    gexpand = jnp.repeat(jnp.eye(E, dtype=f32), H, axis=1)              # (E, E*H)
    ew = jnp.transpose(expert_w, (1, 0, 2)).reshape(D, E * H)           # (D, E*H)
    eb = expert_b.reshape(1, E * H)                                     # (1, E*H)
    sel = jnp.tile(jnp.eye(H, dtype=f32), (E, 1))                       # (E*H, H)
    tw1 = jnp.transpose(tower_w1, (1, 0, 2)).reshape(H, T * Ht)         # (H, T*Ht)
    tb1 = tower_b1.reshape(1, T * Ht)                                   # (1, T*Ht)
    row_task = jnp.repeat(jnp.arange(T), Ht)
    tw2 = jnp.where(row_task[:, None] == jnp.arange(T)[None, :],
                    tower_w2.reshape(T * Ht, 1), 0.0).astype(f32)       # (T*Ht, T)
    tb2 = tower_b2.reshape(1, T)                                        # (1, T)
    gw = gate_w.astype(f32)                                             # (D, E)

    if use_bf16:
        # MXU-native inputs on v6e/v7x (accumulation stays f32 via
        # preferred_element_type). Off by default to keep 1e-5 tolerance.
        cast = lambda a: a.astype(jnp.bfloat16)
        x, gw, gexpand, ew, sel, tw1, tw2 = map(
            cast, (x, gw, gexpand, ew, sel, tw1, tw2))

    # Batch tiling: one "parallel" grid axis (megacore on v7x when B is big).
    bb = 1024 if (B > 1024 and B % 1024 == 0) else B
    grid = (B // bb,)

    full = lambda i: (0, 0)
    out_bt = pl.pallas_call(
        omoe_kernel,
        out_shape=jax.ShapeDtypeStruct((B, T), f32),
        grid_spec=pl.GridSpec(
            grid=grid,
            in_specs=[
                pl.BlockSpec((bb, D), lambda i: (i, 0)),      # x
                pl.BlockSpec((D, E), full),                   # gate weights
                pl.BlockSpec((E, E * H), full),               # gate expand (0/1)
                pl.BlockSpec((D, E * H), full),               # experts W (cat)
                pl.BlockSpec((1, E * H), full),               # experts b (cat)
                pl.BlockSpec((E * H, H), full),               # stacked identity
                pl.BlockSpec((H, T * Ht), full),              # towers W1 (cat)
                pl.BlockSpec((1, T * Ht), full),              # towers b1 (cat)
                pl.BlockSpec((T * Ht, T), full),              # towers W2 (blkdiag)
                pl.BlockSpec((1, T), full),                   # towers b2 (cat)
            ],
            out_specs=pl.BlockSpec((bb, T), lambda i: (i, 0)),
        ),
        compiler_params=pltpu.CompilerParams(
            dimension_semantics=("parallel",)),
    )(x, gw, gexpand, ew, eb, sel, tw1, tb1, tw2, tb2)

    # Present per-task outputs as (T, B, 1), matching the PyTorch list of (B, 1).
    return jnp.transpose(out_bt)[:, :, None]


# ---------------------------------------------------------------------------
# Pure-JAX reference (mirrors the PyTorch forward)
# ---------------------------------------------------------------------------
def omoe_reference(x, gate_w, expert_w, expert_b, tower_w1, tower_b1,
                   tower_w2, tower_b2):
    E = expert_w.shape[0]
    T = tower_w1.shape[0]
    gates = x @ gate_w                                            # (B, E)
    experts = jnp.stack(
        [jnp.maximum(x @ expert_w[e] + expert_b[e, 0], 0.0) for e in range(E)]
    )                                                             # (E, B, H)
    shared = jnp.einsum("be,ebh->bh", gates, experts)             # (B, H)
    outs = []
    for t in range(T):
        h = jnp.maximum(shared @ tower_w1[t] + tower_b1[t, 0], 0.0)
        outs.append(jax.nn.sigmoid(h @ tower_w2[t] + tower_b2[t, 0]))
    return jnp.stack(outs)                                        # (T, B, 1)


if __name__ == "__main__":
    # Small shapes consistent with the module's forward.
    B = 8            # batch
    D = 32           # input_size
    H = 16           # expert_size
    Ht = 8           # tower_size
    E = 4            # num_experts
    T = 2            # num_tasks

    key = jax.random.PRNGKey(0)
    keys = jax.random.split(key, 8)

    x = jax.random.normal(keys[0], (B, D), dtype=jnp.float32)
    # NOTE: PyTorch inits the gate to zeros; we use a deterministic random
    # init so the kernel path is actually exercised.
    gate_w = jax.random.normal(keys[1], (D, E), dtype=jnp.float32) * 0.1
    expert_w = jax.random.normal(keys[2], (E, D, H), dtype=jnp.float32) * 0.1
    expert_b = jax.random.normal(keys[3], (E, 1, H), dtype=jnp.float32) * 0.1
    tower_w1 = jax.random.normal(keys[4], (T, H, Ht), dtype=jnp.float32) * 0.1
    tower_b1 = jax.random.normal(keys[5], (T, 1, Ht), dtype=jnp.float32) * 0.1
    tower_w2 = jax.random.normal(keys[6], (T, Ht, 1), dtype=jnp.float32) * 0.1
    tower_b2 = jax.random.normal(keys[7], (T, 1, 1), dtype=jnp.float32) * 0.1

    args = (x, gate_w, expert_w, expert_b, tower_w1, tower_b1, tower_w2,
            tower_b2)

    out = omoe_forward(*args)
    out = jax.block_until_ready(out)

    ref = omoe_reference(*args)
    assert out.shape == (T, B, 1)
    assert jnp.allclose(out, ref, atol=1e-5, rtol=1e-5), (
        f"max abs err = {jnp.max(jnp.abs(out - ref))}")

    print("KERNEL_OK")
</pallas_src>

<mosaic_0001>
module attributes {stable_mosaic.version = 11 : i64} {
  func.func @omoe_kernel(%arg0: i32, %arg1: memref<8x32xf32, #tpu.memory_space<vmem>>, %arg2: memref<32x4xf32, #tpu.memory_space<vmem>>, %arg3: memref<4x64xf32, #tpu.memory_space<vmem>>, %arg4: memref<32x64xf32, #tpu.memory_space<vmem>>, %arg5: memref<1x64xf32, #tpu.memory_space<vmem>>, %arg6: memref<64x16xf32, #tpu.memory_space<vmem>>, %arg7: memref<16x16xf32, #tpu.memory_space<vmem>>, %arg8: memref<1x16xf32, #tpu.memory_space<vmem>>, %arg9: memref<16x2xf32, #tpu.memory_space<vmem>>, %arg10: memref<1x2xf32, #tpu.memory_space<vmem>>, %arg11: memref<8x2xf32, #tpu.memory_space<vmem>>) attributes {dimension_semantics = [#tpu.dimension_semantics<parallel>], iteration_bounds = array<i64: 1>, scalar_prefetch = 0 : i64, scratch_operands = 0 : i64, tpu.core_type = #tpu.core_type<tc>, window_params = [{transform_indices = @transform_0, window_bounds = array<i64: 8, 32>}, {pipeline_mode = #tpu.pipeline_mode<synchronous>, transform_indices = @transform_1, window_bounds = array<i64: 32, 4>}, {pipeline_mode = #tpu.pipeline_mode<synchronous>, transform_indices = @transform_2, window_bounds = array<i64: 4, 64>}, {pipeline_mode = #tpu.pipeline_mode<synchronous>, transform_indices = @transform_3, window_bounds = array<i64: 32, 64>}, {pipeline_mode = #tpu.pipeline_mode<synchronous>, transform_indices = @transform_4, window_bounds = array<i64: 1, 64>}, {pipeline_mode = #tpu.pipeline_mode<synchronous>, transform_indices = @transform_5, window_bounds = array<i64: 64, 16>}, {pipeline_mode = #tpu.pipeline_mode<synchronous>, transform_indices = @transform_6, window_bounds = array<i64: 16, 16>}, {pipeline_mode = #tpu.pipeline_mode<synchronous>, transform_indices = @transform_7, window_bounds = array<i64: 1, 16>}, {pipeline_mode = #tpu.pipeline_mode<synchronous>, transform_indices = @transform_8, window_bounds = array<i64: 16, 2>}, {pipeline_mode = #tpu.pipeline_mode<synchronous>, transform_indices = @transform_9, window_bounds = array<i64: 1, 2>}, {transform_indices = @transform_10, window_bounds = array<i64: 8, 2>}]} {
    %c0 = arith.constant 0 : index
    %c0_0 = arith.constant 0 : index
    %0 = vector.load %arg1[%c0, %c0_0] : memref<8x32xf32, #tpu.memory_space<vmem>>, vector<8x32xf32>
    %c0_1 = arith.constant 0 : index
    %c0_2 = arith.constant 0 : index
    %1 = vector.load %arg2[%c0_1, %c0_2] : memref<32x4xf32, #tpu.memory_space<vmem>>, vector<32x4xf32>
    %cst = arith.constant dense<0.000000e+00> : vector<8x4xf32>
    %2 = tpu.matmul %0, %1, %cst {dimension_numbers = #tpu.dot_dimension_numbers<[1], [0], [0], [1], [0, 0, 1, 1], [], []>} : vector<8x32xf32>, vector<32x4xf32>, vector<8x4xf32> -> vector<8x4xf32>
    %c0_3 = arith.constant 0 : index
    %c0_4 = arith.constant 0 : index
    %3 = vector.load %arg3[%c0_3, %c0_4] : memref<4x64xf32, #tpu.memory_space<vmem>>, vector<4x64xf32>
    %cst_5 = arith.constant dense<0.000000e+00> : vector<8x64xf32>
    %4 = tpu.matmul %2, %3, %cst_5 {dimension_numbers = #tpu.dot_dimension_numbers<[1], [0], [0], [1], [0, 0, 1, 1], [], []>} : vector<8x4xf32>, vector<4x64xf32>, vector<8x64xf32> -> vector<8x64xf32>
    %c0_6 = arith.constant 0 : index
    %c0_7 = arith.constant 0 : index
    %5 = vector.load %arg4[%c0_6, %c0_7] : memref<32x64xf32, #tpu.memory_space<vmem>>, vector<32x64xf32>
    %cst_8 = arith.constant dense<0.000000e+00> : vector<8x64xf32>
    %6 = tpu.matmul %0, %5, %cst_8 {dimension_numbers = #tpu.dot_dimension_numbers<[1], [0], [0], [1], [0, 0, 1, 1], [], []>} : vector<8x32xf32>, vector<32x64xf32>, vector<8x64xf32> -> vector<8x64xf32>
    %c0_9 = arith.constant 0 : index
    %c0_10 = arith.constant 0 : index
    %7 = vector.load %arg5[%c0_9, %c0_10] : memref<1x64xf32, #tpu.memory_space<vmem>>, vector<1x64xf32>
    %8 = vector.broadcast %7 : vector<1x64xf32> to vector<8x64xf32>
    %9 = arith.addf %6, %8 : vector<8x64xf32>
    %cst_11 = arith.constant 0.000000e+00 : f32
    %10 = vector.broadcast %cst_11 : f32 to vector<8x64xf32>
    %11 = arith.maximumf %9, %10 : vector<8x64xf32>
    %12 = arith.mulf %4, %11 : vector<8x64xf32>
    %c0_12 = arith.constant 0 : index
    %c0_13 = arith.constant 0 : index
    %13 = vector.load %arg6[%c0_12, %c0_13] : memref<64x16xf32, #tpu.memory_space<vmem>>, vector<64x16xf32>
    %cst_14 = arith.constant dense<0.000000e+00> : vector<8x16xf32>
    %14 = tpu.matmul %12, %13, %cst_14 {dimension_numbers = #tpu.dot_dimension_numbers<[1], [0], [0], [1], [0, 0, 1, 1], [], []>} : vector<8x64xf32>, vector<64x16xf32>, vector<8x16xf32> -> vector<8x16xf32>
    %c0_15 = arith.constant 0 : index
    %c0_16 = arith.constant 0 : index
    %15 = vector.load %arg7[%c0_15, %c0_16] : memref<16x16xf32, #tpu.memory_space<vmem>>, vector<16x16xf32>
    %cst_17 = arith.constant dense<0.000000e+00> : vector<8x16xf32>
    %16 = tpu.matmul %14, %15, %cst_17 {dimension_numbers = #tpu.dot_dimension_numbers<[1], [0], [0], [1], [0, 0, 1, 1], [], []>} : vector<8x16xf32>, vector<16x16xf32>, vector<8x16xf32> -> vector<8x16xf32>
    %c0_18 = arith.constant 0 : index
    %c0_19 = arith.constant 0 : index
    %17 = vector.load %arg8[%c0_18, %c0_19] : memref<1x16xf32, #tpu.memory_space<vmem>>, vector<1x16xf32>
    %18 = vector.broadcast %17 : vector<1x16xf32> to vector<8x16xf32>
    %19 = arith.addf %16, %18 : vector<8x16xf32>
    %cst_20 = arith.constant 0.000000e+00 : f32
    %20 = vector.broadcast %cst_20 : f32 to vector<8x16xf32>
    %21 = arith.maximumf %19, %20 : vector<8x16xf32>
    %c0_21 = arith.constant 0 : index
    %c0_22 = arith.constant 0 : index
    %22 = vector.load %arg9[%c0_21, %c0_22] : memref<16x2xf32, #tpu.memory_space<vmem>>, vector<16x2xf32>
    %cst_23 = arith.constant dense<0.000000e+00> : vector<8x2xf32>
    %23 = tpu.matmul %21, %22, %cst_23 {dimension_numbers = #tpu.dot_dimension_numbers<[1], [0], [0], [1], [0, 0, 1, 1], [], []>} : vector<8x16xf32>, vector<16x2xf32>, vector<8x2xf32> -> vector<8x2xf32>
    %c0_24 = arith.constant 0 : index
    %c0_25 = arith.constant 0 : index
    %24 = vector.load %arg10[%c0_24, %c0_25] : memref<1x2xf32, #tpu.memory_space<vmem>>, vector<1x2xf32>
    %25 = vector.broadcast %24 : vector<1x2xf32> to vector<8x2xf32>
    %26 = arith.addf %23, %25 : vector<8x2xf32>
    %27 = arith.negf %26 : vector<8x2xf32>
    %28 = math.exp %27 : vector<8x2xf32>
    %cst_26 = arith.constant 1.000000e+00 : f32
    %29 = vector.broadcast %cst_26 : f32 to vector<8x2xf32>
    %30 = arith.addf %29, %28 : vector<8x2xf32>
    %31 = arith.divf %29, %30 : vector<8x2xf32>
    %c0_27 = arith.constant 0 : index
    %c0_28 = arith.constant 0 : index
    %32 = vector.load %arg11[%c0_27, %c0_28] : memref<8x2xf32, #tpu.memory_space<vmem>>, vector<8x2xf32>
    tpu.vector_store %arg11[%c0_27, %c0_28], %31 {strides = array<i32>} : memref<8x2xf32, #tpu.memory_space<vmem>>, vector<8x2xf32>,
    return
  }
  func.func @transform_0(%arg0: i32) -> (i32, i32) {
    %c0_i32 = arith.constant 0 : i32
    %c0_i32_0 = arith.constant 0 : i32
    return %arg0, %c0_i32 : i32, i32
  }
  func.func @transform_1(%arg0: i32) -> (i32, i32) {
    %c0_i32 = arith.constant 0 : i32
    %c0_i32_0 = arith.constant 0 : i32
    %c0_i32_1 = arith.constant 0 : i32
    return %c0_i32, %c0_i32_0 : i32, i32
  }
  func.func @transform_2(%arg0: i32) -> (i32, i32) {
    %c0_i32 = arith.constant 0 : i32
    %c0_i32_0 = arith.constant 0 : i32
    %c0_i32_1 = arith.constant 0 : i32
    return %c0_i32, %c0_i32_0 : i32, i32
  }
  func.func @transform_3(%arg0: i32) -> (i32, i32) {
    %c0_i32 = arith.constant 0 : i32
    %c0_i32_0 = arith.constant 0 : i32
    %c0_i32_1 = arith.constant 0 : i32
    return %c0_i32, %c0_i32_0 : i32, i32
  }
  func.func @transform_4(%arg0: i32) -> (i32, i32) {
    %c0_i32 = arith.constant 0 : i32
    %c0_i32_0 = arith.constant 0 : i32
    %c0_i32_1 = arith.constant 0 : i32
    return %c0_i32, %c0_i32_0 : i32, i32
  }
  func.func @transform_5(%arg0: i32) -> (i32, i32) {
    %c0_i32 = arith.constant 0 : i32
    %c0_i32_0 = arith.constant 0 : i32
    %c0_i32_1 = arith.constant 0 : i32
    return %c0_i32, %c0_i32_0 : i32, i32
  }
  func.func @transform_6(%arg0: i32) -> (i32, i32) {
    %c0_i32 = arith.constant 0 : i32
    %c0_i32_0 = arith.constant 0 : i32
    %c0_i32_1 = arith.constant 0 : i32
    return %c0_i32, %c0_i32_0 : i32, i32
  }
  func.func @transform_7(%arg0: i32) -> (i32, i32) {
    %c0_i32 = arith.constant 0 : i32
    %c0_i32_0 = arith.constant 0 : i32
    %c0_i32_1 = arith.constant 0 : i32
    return %c0_i32, %c0_i32_0 : i32, i32
  }
  func.func @transform_8(%arg0: i32) -> (i32, i32) {
    %c0_i32 = arith.constant 0 : i32
    %c0_i32_0 = arith.constant 0 : i32
    %c0_i32_1 = arith.constant 0 : i32
    return %c0_i32, %c0_i32_0 : i32, i32
  }
  func.func @transform_9(%arg0: i32) -> (i32, i32) {
    %c0_i32 = arith.constant 0 : i32
    %c0_i32_0 = arith.constant 0 : i32
    %c0_i32_1 = arith.constant 0 : i32
    return %c0_i32, %c0_i32_0 : i32, i32
  }
  func.func @transform_10(%arg0: i32) -> (i32, i32) {
    %c0_i32 = arith.constant 0 : i32
    %c0_i32_0 = arith.constant 0 : i32
    return %arg0, %c0_i32 : i32, i32
  }
}

</mosaic_0001>

<bundles_post_ra>
// kernel: eq.12
= control target key start
LH: loop header
LB: loop body
LE: loop exit
PB: predicated region body
PF: predicated region fallthrough
CT: control target
= control target key end

     0   :  { %vm8_vm0 = vcmask 64512   ;;  %vm14_vm1 = vcmask 130112   ;;  %s42_s0 = inlined_call_operand.vmem [shape: s32[2,8], index: 0, kind: input, shape index: {}]   ;;  %s43_s1 = inlined_call_operand.vmem [shape: s32[16], index: 1, kind: output, shape index: {}]  }
   0x1   :  { %v5_v0 = vld [vmem:[%s42_s0] sm:$0x3]  ;;  %s25_s0 = smov 8  }
   0x2   :  { %6 = vst [vmem:[#allocation1] sm:$0x3] %v5_v0 }
   0x9   :  { %v11_v1 = vld [vmem:[#allocation1 + $0x1] sm:$0x1]   ;;  %v7_v2 = vld [vmem:[#allocation1] sm:$0x1]  }
   0xa   :  { %12 = vrot.lane.b32.xlu0 %v11_v1, %s25_s0  ;;  %9 = vst.msk [vmem:[#allocation0] sm:$0x1] %vm8_vm0, %v7_v2  }
  0x7c   :  { %v13_v3 = vpop.permute.xlu0 %12  }
  0x7d   :  { %15 = vst.msk [vmem:[#allocation0] sm:$0x1] %vm14_vm1, %v13_v3  }
  0x84   :  { %v20_v4 = vld [vmem:[#allocation0] sm:$0x1] }
  0x85   :  { %23 = vst [vmem:[%s43_s1] sm:$0x1] %v20_v4 }

// kernel: omoe_forward.1
= control target key start
LH: loop header
LB: loop body
LE: loop exit
PB: predicated region body
PF: predicated region fallthrough
CT: control target
= control target key end

     0   :  { %vm119_vm0 = vcmask 1043456   ;;  %v640_v0 = vmov 0.0   ;;  %vm641_vm1 = vmmov 0   ;;  %vm40_vm2 = vcmask 261120   ;;  %s812_s1 = inlined_call_operand.vmem [shape: f32[32,4], index: 1, kind: input, shape index: {}]   ;;  %s813_s2 = inlined_call_operand.vmem [shape: f32[4,64], index: 2, kind: input, shape index: {}]   ;;  %s814_s0 = inlined_call_operand.vmem [shape: f32[8,32], index: 0, kind: input, shape index: {}]   ;;  %s815_s5 = inlined_call_operand.vmem [shape: f32[64,16], index: 5, kind: input, shape index: {}]   ;;  %s816_s3 = inlined_call_operand.vmem [shape: f32[32,64], index: 3, kind: input, shape index: {}]   ;;  %s817_s6 = inlined_call_operand.vmem [shape: f32[16,16], index: 6, kind: input, shape index: {}]   ;;  %s818_s4 = inlined_call_operand.vmem [shape: f32[1,64], index: 4, kind: input, shape index: {}]   ;;  %s819_s8 = inlined_call_operand.vmem [shape: f32[16,2], index: 8, kind: input, shape index: {}]   ;;  %s820_s7 = inlined_call_operand.vmem [shape: f32[1,16], index: 7, kind: input, shape index: {}]   ;;  %s821_s9 = inlined_call_operand.vmem [shape: f32[1,2], index: 9, kind: input, shape index: {}]   ;;  %s822_s10 = inlined_call_operand.vmem [shape: f32[8,2], index: 10, kind: output, shape index: {}]  }
   0x1   :  { %574 = vmatprep.subr.mxu0 %v640_v0  ;;  %v39_v1 = vld [vmem:[%s812_s1 + $0x18] sm:$0xff]  ;;  %v38_v2 = vld [vmem:[%s812_s1 + $0x10] sm:$0xff]  ;;  %582 = vmatprep.mubr.msk.f32.mxu0 %vm641_vm1, %v640_v0  ;;  %v114_v3 = vld [vmem:[%s813_s2] sm:$0xf]  ;;  %vm115_vm3 = vcmask 31744   ;;  %vm284_vm4 = vcmask 523264  }
   0x2   :  { %575 = vmatpush3.msra.mxu0 %v39_v1  ;;  %585 = vmatprep.subr.mxu1 %v640_v0  ;;  %v37_v4 = vld [vmem:[%s812_s1 + $0x8] sm:$0xff]  ;;  %v36_v5 = vld [vmem:[%s812_s1] sm:$0xff]  ;;  %v283_v7 = vld [vmem:[%s815_s5 + $0x38] sm:$0xff]  ;;  %vm367_vm5 = vcmask 130048   ;;  %vm530_vm6 = vcmask 15360  }
   0x3   :  { %576 = vmatprep.subr.mxu0 %v640_v0  ;;  %586 = vmatpush3.msk.msra.mxu1 %vm119_vm0, %v114_v3  ;;  %v35_v6 = vld [vmem:[%s814_s0] sm:$0xff]  ;;  %v196_v8 = vld [vmem:[%s816_s3 + $0x18] sm:$0xff]  ;;  %v195_v10 = vld [vmem:[%s816_s3 + $0x10] sm:$0xff] }
   0x4   :  { %577 = vmatpush3.msra.mxu0 %v38_v2  ;;  %587 = vmatprep.mubr.msk.f32.mxu1 %vm641_vm1, %v640_v0  ;;  %v194_v12 = vld [vmem:[%s816_s3 + $0x8] sm:$0xff]  ;;  %v193_v13 = vld [vmem:[%s816_s3] sm:$0xff]  ;;  %v282_v14 = vld [vmem:[%s815_s5 + $0x30] sm:$0xff] }
   0x5   :  { %578 = vmatprep.subr.mxu0 %v640_v0  ;;  %590 = vmatprep.subr.mxu1 %v640_v0  ;;  %v281_v15 = vld [vmem:[%s815_s5 + $0x28] sm:$0xff]  ;;  %v280_v16 = vld [vmem:[%s815_s5 + $0x20] sm:$0xff]  ;;  %v279_v17 = vld [vmem:[%s815_s5 + $0x18] sm:$0xff] }
   0x6   :  { %579 = vmatpush3.msra.mxu0 %v37_v4  ;;  %v278_v18 = vld [vmem:[%s815_s5 + $0x10] sm:$0xff]  ;;  %v277_v19 = vld [vmem:[%s815_s5 + $0x8] sm:$0xff]  ;;  %v276_v20 = vld [vmem:[%s815_s5] sm:$0xff] }
   0x7   :  { %580 = vmatprep.subr.mxu0 %v640_v0  ;;  %v359_v21 = vld [vmem:[%s817_s6 + $0x8] sm:$0xff]  ;;  %v358_v22 = vld [vmem:[%s817_s6] sm:$0xff] }
   0x8   :  { %581 = vmatpush3.msra.mxu0 %v36_v5  ;;  %v539_v25 = vld [vmem:[%s818_s4] ss:$0 sm:$0xff]  ;;  %v443_v33 = vld [vmem:[%s819_s8 + $0x8] sm:$0xff] }
   0x9   :  { %583 = vmatmul.mubr.msk.f32.vlgmr.msra.gmra.mxu0 %vm40_vm2, %v35_v6  ;;  %601 = vmatprep.subr.mxu0 %v640_v0  ;;  %v442_v34 = vld [vmem:[%s819_s8] sm:$0xff] }
   0xa   :  { %617 = vmatprep.mubr.msk.f32.mxu0 %vm641_vm1, %v640_v0  ;;  %602 = vmatpush3.msra.mxu0 %v283_v7  ;;  %v542_v35 = vld [vmem:[%s820_s7] ss:$0 sm:$0xff] }
   0xb   :  { %603 = vmatprep.subr.mxu0 %v640_v0  ;;  %v544_v40 = vld [vmem:[%s821_s9] ss:$0 sm:$0xff] }
   0xc   :  { %604 = vmatpush3.msra.mxu0 %v282_v14 }
   0xd   :  { %605 = vmatprep.subr.mxu0 %v640_v0 }
   0xe   :  { %606 = vmatpush3.msra.mxu0 %v281_v15 }
   0xf   :  { %607 = vmatprep.subr.mxu0 %v640_v0 }
  0x10   :  { %608 = vmatpush3.msra.mxu0 %v280_v16 }
  0x11   :  { %609 = vmatprep.subr.mxu0 %v640_v0 }
  0x12   :  { %610 = vmatpush3.msra.mxu0 %v279_v17 }
  0x13   :  { %611 = vmatprep.subr.mxu0 %v640_v0 }
  0x14   :  { %612 = vmatpush3.msra.mxu0 %v278_v18 }
  0x15   :  { %613 = vmatprep.subr.mxu0 %v640_v0 }
  0x16   :  { %614 = vmatpush3.msra.mxu0 %v277_v19 }
  0x17   :  { %615 = vmatprep.subr.mxu0 %v640_v0 }
  0x18   :  { %616 = vmatpush3.msra.mxu0 %v276_v20 }
  0xc9   :  { %v110_v9 = vpop.f32.mrf.mxu0 }
  0xca   :  { %588 = vmatmul.mubr.msk.f32.vlgmr.msra.gmra.mxu1 %vm115_vm3, %v110_v9 }
  0xcb   :  { %591 = vmatpush3.msra.mxu1 %v196_v8  ;;  %v584_v11 = vpop.f32.mrf.mxu0  ;;  %598 = vmatprep.mubr.msk.f32.mxu1 %vm641_vm1, %v640_v0 }
  0xcc   :  { %592 = vmatprep.subr.mxu1 %v640_v0 }
  0xcd   :  { %593 = vmatpush3.msra.mxu1 %v195_v10 }
  0xce   :  { %594 = vmatprep.subr.mxu1 %v640_v0 }
  0xcf   :  { %595 = vmatpush3.msra.mxu1 %v194_v12 }
  0xd0   :  { %596 = vmatprep.subr.mxu1 %v640_v0 }
  0xd1   :  { %597 = vmatpush3.msra.mxu1 %v193_v13 }
  0xd2   :  { %599 = vmatmul.mubr.msk.f32.vlgmr.msra.gmra.mxu1 %vm40_vm2, %v35_v6  ;;  %620 = vmatprep.subr.mxu1 %v640_v0 }
  0xd3   :  { %624 = vmatprep.mubr.msk.f32.mxu1 %vm641_vm1, %v640_v0  ;;  %621 = vmatpush3.msra.mxu1 %v359_v21 }
  0xd4   :  { %622 = vmatprep.subr.mxu1 %v640_v0 }
  0xd5   :  { %623 = vmatpush3.msra.mxu1 %v358_v22 }
  0xd6   :  { %627 = vmatprep.subr.mxu1 %v640_v0 }
 0x18a   :  { %v189_v23 = vpop.f32.mrf.mxu1 }
 0x18c   :  { %v589_v24 = vpop.f32.mrf.mxu1 }
 0x192   :  { %v270_v26 = vpop.f32.mrf.mxu1 }
 0x193   :  { %v271_v27 = vadd.f32 %v539_v25, %v270_v26 }
 0x194   :  { %v600_v28 = vpop.f32.mrf.mxu1 }
 0x195   :  { %v274_v29 = vmax.f32 %v271_v27, 0.0 }
 0x197   :  { %v275_v30 = vmul.f32 %v274_v29, %v189_v23 }
 0x199   :  { %618 = vmatmul.mubr.msk.f32.vlgmr.msra.gmra.mxu0 %vm284_vm4, %v275_v30 }
 0x259   :  { %v354_v31 = vpop.f32.mrf.mxu0 }
 0x25a   :  { %625 = vmatmul.mubr.msk.f32.vlgmr.msra.gmra.mxu1 %vm367_vm5, %v354_v31 }
 0x25b   :  { %v619_v32 = vpop.f32.mrf.mxu0  ;;  %631 = vmatprep.mubr.msk.f32.mxu1 %vm641_vm1, %v640_v0  ;;  %628 = vmatpush3.msra.mxu1 %v443_v33 }
 0x25c   :  { %629 = vmatprep.subr.mxu1 %v640_v0 }
 0x25d   :  { %630 = vmatpush3.msra.mxu1 %v442_v34 }
 0x31a   :  { %v437_v36 = vpop.f32.mrf.mxu1 }
 0x31b   :  { %v438_v37 = vadd.f32 %v542_v35, %v437_v36 }
 0x31c   :  { %v626_v38 = vpop.f32.mrf.mxu1 }
 0x31d   :  { %v441_v39 = vmax.f32 %v438_v37, 0.0 }
 0x31f   :  { %632 = vmatmul.mubr.msk.f32.vlgmr.msra.gmra.mxu1 %vm367_vm5, %v441_v39 }
 0x3df   :  { %v520_v41 = vpop.f32.mrf.mxu1 }
 0x3e0   :  { %v521_v42 = vadd.f32 %v544_v40, %v520_v41 }
 0x3e1   :  { %v633_v43 = vpop.f32.mrf.mxu1 }
 0x3e2   :  { %v546_v44 = vmul.f32 -1.442695, %v521_v42 }
 0x3e4   :  { %636 = vpow2.f32 %v546_v44 }
 0x3f1   :  { %v637_v45 = vpop.eup %636 }
 0x3f2   :  { %v527_v46 = vadd.f32 1.0, %v637_v45 }
 0x3f4   :  { %638 = vrcp.f32 %v527_v46 }
 0x401   :  { %v639_v47 = vpop.eup %638 }
 0x402   :  { %531 = vst.msk [vmem:[%s822_s10] sm:$0xff] %vm530_vm6, %v639_v47 }

</bundles_post_ra>
